<compile_context>
chip_gen: v5e
topology: v5e:2x2
jax: 0.10.0
libtpu: 0.0.40
codegen_flags: <defaults>
</compile_context>

<pallas_src>
import functools

import jax
import jax.numpy as jnp
from jax.experimental import pallas as pl
from jax.experimental.pallas import tpu as pltpu


def _rule_kernel(x_ref, rand_ref, drop_ref, state_ref, obvs_ref, sp_ref, *,
                 channels, radius, pd):
    C = channels
    R = radius

    xb = x_ref[...]                       # (1, C+1, H, W)   one batch element
    s = xb[:, :C]                         # (1, C, H, W)     spins
    b = xb[:, C:C + 1]                    # (1, 1, H, W)     inverse-temperature field
    H = s.shape[2]
    W = s.shape[3]

    # ---- build the halo-padded spin field in VMEM (no extra HBM traffic) --------
    # Zero-init covers the pd=False halo; the plus-shaped stencil never reads the
    # corners, so only the interior and the four edge bands matter.
    sp_ref[...] = jnp.zeros(sp_ref.shape, sp_ref.dtype)
    sp_ref[:, :, R:R + H, R:R + W] = s
    if pd:  # circular wrap (F.pad mode='circular')
        sp_ref[:, :, 0:R, R:R + W] = s[:, :, H - R:H, :]
        sp_ref[:, :, R + H:2 * R + H, R:R + W] = s[:, :, 0:R, :]
        sp_ref[:, :, R:R + H, 0:R] = s[:, :, :, W - R:W]
        sp_ref[:, :, R:R + H, R + W:2 * R + W] = s[:, :, :, 0:R]

    sp = sp_ref[...]                      # (1, C, H+2R, W+2R)

    # Plus-shaped (von Neumann) neighbour sum == unfold(s_pad, 2R+1)*nearest_neighbours
    nb = jnp.zeros_like(s)
    for k in range(1, R + 1):
        nb = nb + sp[:, :, R - k:R - k + H, R:R + W]    # k rows up
        nb = nb + sp[:, :, R + k:R + k + H, R:R + W]    # k rows down
        nb = nb + sp[:, :, R:R + H, R - k:R - k + W]    # k cols left
        nb = nb + sp[:, :, R:R + H, R + k:R + k + W]    # k cols right

    # delta_e = 2*s*nb ; E = -0.5*delta_e = -s*nb  (single product reused everywhere)
    snb = s * nb                          # (1, C, H, W)
    delta_e = 2.0 * snb

    # ---- per-batch observables: e, e^2, |m|, m^2 --------------------------------
    e = -0.25 * jnp.sum(jnp.sum(snb, axis=(2, 3)), axis=1, keepdims=True)       # (1, 1)
    ms = jnp.sum(jnp.sum(s, axis=(2, 3)), axis=1, keepdims=True) / float(C * H * W)
    obvs_ref[0, :, 0:1] = e
    obvs_ref[0, :, 1:2] = e * e
    obvs_ref[0, :, 2:3] = jnp.abs(ms)
    obvs_ref[0, :, 3:4] = ms * ms

    # ---- Metropolis flips --------------------------------------------------------
    # exp may overflow for the delta_e <= 0 branch, but that lane is selected away
    # (inf, not NaN), matching the torch semantics.
    p = jnp.exp(-delta_e * b)
    p = jnp.where(delta_e <= 0.0, jnp.ones_like(p), p)

    rand = rand_ref[...]                  # (1, C, H, W) uniform [0, 1)
    drop = drop_ref[...] > 0.9            # (H, W), broadcasts over (1, C)
    flip_mask = jnp.logical_and(rand < p, drop)
    flip = 1.0 - 2.0 * flip_mask.astype(s.dtype)

    # Only the spin channels are written; the beta channel stays in place via
    # input/output aliasing of x -> state.
    state_ref[...] = s * flip


def rule_forward(x, rand, drop_rand, *, channels=1, radius=1, pd=True):
    """Pallas equivalent of Rule.forward.  Returns (state, obvs) with
    state: (N, channels+1, H, W), obvs: (4, N) = stack([e, e2, m, m2])."""
    N, ctot, H, W = x.shape
    assert ctot == channels + 1, "x must carry `channels` spin channels + 1 beta channel"
    R = radius

    kernel = functools.partial(_rule_kernel, channels=channels, radius=radius, pd=pd)

    state, obvs_n14 = pl.pallas_call(
        kernel,
        out_shape=(
            jax.ShapeDtypeStruct((N, channels + 1, H, W), x.dtype),   # aliased with x
            jax.ShapeDtypeStruct((N, 1, 4), jnp.float32),             # per-batch observables
        ),
        grid=(N,),
        in_specs=[
            pl.BlockSpec((1, channels + 1, H, W), lambda n: (n, 0, 0, 0)),  # x
            pl.BlockSpec((1, channels, H, W), lambda n: (n, 0, 0, 0)),      # rand
            pl.BlockSpec((H, W), lambda n: (0, 0)),                          # dropout field
        ],
        out_specs=(
            # only the spin channels are ever written; beta stays via aliasing
            pl.BlockSpec((1, channels, H, W), lambda n: (n, 0, 0, 0)),
            pl.BlockSpec((1, 1, 4), lambda n: (n, 0, 0)),
        ),
        scratch_shapes=[
            pltpu.VMEM((1, channels, H + 2 * R, W + 2 * R), x.dtype),  # halo-padded spins
        ],
        input_output_aliases={0: 0},
        compiler_params=pltpu.CompilerParams(
            dimension_semantics=("parallel",),   # batch axis: megacore-shardable on v7x
        ),
    )(x, rand, drop_rand)

    obvs = obvs_n14.reshape(N, 4).T        # (4, N), matching torch.stack([...], axis=0)
    return state, obvs


def _reference_forward(x, rand, drop_rand, channels=1, pd=True):
    """Plain-JAX reference mirroring the torch code (CHANNELS == 1, RADIUS == 1)."""
    s = x[:, :channels]
    b = x[:, -1:]
    if pd:
        nb = (jnp.roll(s, 1, 2) + jnp.roll(s, -1, 2) +
              jnp.roll(s, 1, 3) + jnp.roll(s, -1, 3))
    else:
        sp = jnp.pad(s, ((0, 0), (0, 0), (1, 1), (1, 1)))
        H, W = s.shape[2], s.shape[3]
        nb = (sp[:, :, 0:H, 1:W + 1] + sp[:, :, 2:H + 2, 1:W + 1] +
              sp[:, :, 1:H + 1, 0:W] + sp[:, :, 1:H + 1, 2:W + 2])
    delta_e = 2.0 * s * nb
    E = -0.5 * delta_e
    e = jnp.sum(E / 4.0, axis=(1, 2, 3))
    ms = jnp.mean(s, axis=(1, 2, 3))
    obvs = jnp.stack([e, e * e, jnp.abs(ms), ms * ms], axis=0)
    p = jnp.where(delta_e <= 0.0, 1.0, jnp.exp(-delta_e * b))
    flip = 1.0 - 2.0 * jnp.logical_and(rand < p, drop_rand > 0.9).astype(s.dtype)
    state = jnp.concatenate([s * flip, b], axis=1)
    return state, obvs


if __name__ == "__main__":
    # Small shapes consistent with the module: RES=(16,16), CHANNELS=1, RADIUS=1.
    # (The torch forward's `.view(*shape)` only works for CHANNELS == 1.)
    N, CH, H, W = 2, 1, 16, 16
    key = jax.random.PRNGKey(0)
    k1, k2, k3 = jax.random.split(key, 3)

    # Ising spins in {-1, +1}, plus a constant inverse-temperature channel.
    s0 = jnp.where(jax.random.uniform(k1, (N, CH, H, W)) > 0.5, 1.0, -1.0).astype(jnp.float32)
    beta_field = jnp.full((N, 1, H, W), 0.44, dtype=jnp.float32)
    x = jnp.concatenate([s0, beta_field], axis=1)          # (N, CH+1, H, W)

    rand = jax.random.uniform(k2, (N, CH, H, W), dtype=jnp.float32)       # torch.rand_like(s)
    drop_rand = jax.random.uniform(k3, (H, W), dtype=jnp.float32)         # torch.rand_like(s[0,0])

    # Compute the reference first (x may be aliased/donated into the kernel output).
    ref_state, ref_obvs = _reference_forward(x, rand, drop_rand, channels=CH, pd=True)

    state, obvs = rule_forward(x, rand, drop_rand, channels=CH, radius=1, pd=True)
    jax.block_until_ready((state, obvs))

    assert state.shape == (N, CH + 1, H, W) and obvs.shape == (4, N)
    assert jnp.allclose(state, ref_state, atol=1e-5, rtol=1e-5)
    assert jnp.allclose(obvs, ref_obvs, atol=1e-5, rtol=1e-5)

    print("KERNEL_OK")
</pallas_src>

<mosaic_0001>
module attributes {stable_mosaic.version = 11 : i64} {
  func.func @_rule_kernel(%arg0: i32, %arg1: memref<1x2x16x16xf32, #tpu.memory_space<vmem>>, %arg2: memref<1x1x16x16xf32, #tpu.memory_space<vmem>>, %arg3: memref<16x16xf32, #tpu.memory_space<vmem>>, %arg4: memref<1x1x16x16xf32, #tpu.memory_space<vmem>>, %arg5: memref<1x1x4xf32, #tpu.memory_space<vmem>>, %arg6: memref<1x1x18x18xf32, #tpu.memory_space<vmem>>) attributes {dimension_semantics = [#tpu.dimension_semantics<parallel>], iteration_bounds = array<i64: 2>, scalar_prefetch = 0 : i64, scratch_operands = 1 : i64, tpu.core_type = #tpu.core_type<tc>, window_params = [{transform_indices = @transform_0, window_bounds = array<i64: 1, 2, 16, 16>}, {transform_indices = @transform_1, window_bounds = array<i64: 1, 1, 16, 16>}, {pipeline_mode = #tpu.pipeline_mode<synchronous>, transform_indices = @transform_2, window_bounds = array<i64: 16, 16>}, {transform_indices = @transform_3, window_bounds = array<i64: 1, 1, 16, 16>}, {transform_indices = @transform_4, window_bounds = array<i64: 1, 1, 4>}]} {
    %c0 = arith.constant 0 : index
    %c0_0 = arith.constant 0 : index
    %c0_1 = arith.constant 0 : index
    %c0_2 = arith.constant 0 : index
    %0 = vector.load %arg1[%c0, %c0_0, %c0_1, %c0_2] : memref<1x2x16x16xf32, #tpu.memory_space<vmem>>, vector<1x2x16x16xf32>
    %1 = vector.extract_strided_slice %0 {offsets = [0, 0, 0, 0], sizes = [1, 1, 16, 16], strides = [1, 1, 1, 1]} : vector<1x2x16x16xf32> to vector<1x1x16x16xf32>
    %2 = vector.extract_strided_slice %0 {offsets = [0, 1, 0, 0], sizes = [1, 1, 16, 16], strides = [1, 1, 1, 1]} : vector<1x2x16x16xf32> to vector<1x1x16x16xf32>
    %cst = arith.constant 0.000000e+00 : f32
    %3 = vector.broadcast %cst : f32 to vector<1x1x18x18xf32>
    %c0_3 = arith.constant 0 : index
    %c0_4 = arith.constant 0 : index
    %c0_5 = arith.constant 0 : index
    %c0_6 = arith.constant 0 : index
    %4 = vector.load %arg6[%c0_3, %c0_4, %c0_5, %c0_6] : memref<1x1x18x18xf32, #tpu.memory_space<vmem>>, vector<1x1x18x18xf32>
    tpu.vector_store %arg6[%c0_3, %c0_4, %c0_5, %c0_6], %3 {strides = array<i32>} : memref<1x1x18x18xf32, #tpu.memory_space<vmem>>, vector<1x1x18x18xf32>,
    %c0_7 = arith.constant 0 : index
    %c0_8 = arith.constant 0 : index
    %c1 = arith.constant 1 : index
    %c1_9 = arith.constant 1 : index
    %5 = vector.load %arg6[%c0_7, %c0_8, %c1, %c1_9] : memref<1x1x18x18xf32, #tpu.memory_space<vmem>>, vector<1x1x16x16xf32>
    tpu.vector_store %arg6[%c0_7, %c0_8, %c1, %c1_9], %1 {strides = array<i32>} : memref<1x1x18x18xf32, #tpu.memory_space<vmem>>, vector<1x1x16x16xf32>,
    %6 = vector.extract_strided_slice %1 {offsets = [0, 0, 15, 0], sizes = [1, 1, 1, 16], strides = [1, 1, 1, 1]} : vector<1x1x16x16xf32> to vector<1x1x1x16xf32>
    %c0_10 = arith.constant 0 : index
    %c0_11 = arith.constant 0 : index
    %c0_12 = arith.constant 0 : index
    %c1_13 = arith.constant 1 : index
    %7 = vector.load %arg6[%c0_10, %c0_11, %c0_12, %c1_13] : memref<1x1x18x18xf32, #tpu.memory_space<vmem>>, vector<1x1x1x16xf32>
    tpu.vector_store %arg6[%c0_10, %c0_11, %c0_12, %c1_13], %6 {strides = array<i32>} : memref<1x1x18x18xf32, #tpu.memory_space<vmem>>, vector<1x1x1x16xf32>,
    %8 = vector.extract_strided_slice %1 {offsets = [0, 0, 0, 0], sizes = [1, 1, 1, 16], strides = [1, 1, 1, 1]} : vector<1x1x16x16xf32> to vector<1x1x1x16xf32>
    %c0_14 = arith.constant 0 : index
    %c0_15 = arith.constant 0 : index
    %c17 = arith.constant 17 : index
    %c1_16 = arith.constant 1 : index
    %9 = vector.load %arg6[%c0_14, %c0_15, %c17, %c1_16] : memref<1x1x18x18xf32, #tpu.memory_space<vmem>>, vector<1x1x1x16xf32>
    tpu.vector_store %arg6[%c0_14, %c0_15, %c17, %c1_16], %8 {strides = array<i32>} : memref<1x1x18x18xf32, #tpu.memory_space<vmem>>, vector<1x1x1x16xf32>,
    %10 = vector.extract_strided_slice %1 {offsets = [0, 0, 0, 15], sizes = [1, 1, 16, 1], strides = [1, 1, 1, 1]} : vector<1x1x16x16xf32> to vector<1x1x16x1xf32>
    %c0_17 = arith.constant 0 : index
    %c0_18 = arith.constant 0 : index
    %c1_19 = arith.constant 1 : index
    %c0_20 = arith.constant 0 : index
    %11 = vector.load %arg6[%c0_17, %c0_18, %c1_19, %c0_20] : memref<1x1x18x18xf32, #tpu.memory_space<vmem>>, vector<1x1x16x1xf32>
    tpu.vector_store %arg6[%c0_17, %c0_18, %c1_19, %c0_20], %10 {strides = array<i32>} : memref<1x1x18x18xf32, #tpu.memory_space<vmem>>, vector<1x1x16x1xf32>,
    %12 = vector.extract_strided_slice %1 {offsets = [0, 0, 0, 0], sizes = [1, 1, 16, 1], strides = [1, 1, 1, 1]} : vector<1x1x16x16xf32> to vector<1x1x16x1xf32>
    %c0_21 = arith.constant 0 : index
    %c0_22 = arith.constant 0 : index
    %c1_23 = arith.constant 1 : index
    %c17_24 = arith.constant 17 : index
    %13 = vector.load %arg6[%c0_21, %c0_22, %c1_23, %c17_24] : memref<1x1x18x18xf32, #tpu.memory_space<vmem>>, vector<1x1x16x1xf32>
    tpu.vector_store %arg6[%c0_21, %c0_22, %c1_23, %c17_24], %12 {strides = array<i32>} : memref<1x1x18x18xf32, #tpu.memory_space<vmem>>, vector<1x1x16x1xf32>,
    %c0_25 = arith.constant 0 : index
    %c0_26 = arith.constant 0 : index
    %c0_27 = arith.constant 0 : index
    %c0_28 = arith.constant 0 : index
    %14 = vector.load %arg6[%c0_25, %c0_26, %c0_27, %c0_28] : memref<1x1x18x18xf32, #tpu.memory_space<vmem>>, vector<1x1x18x18xf32>
    %cst_29 = arith.constant 0.000000e+00 : f32
    %15 = vector.broadcast %cst_29 : f32 to vector<1x1x16x16xf32>
    %16 = vector.extract_strided_slice %14 {offsets = [0, 0, 0, 1], sizes = [1, 1, 16, 16], strides = [1, 1, 1, 1]} : vector<1x1x18x18xf32> to vector<1x1x16x16xf32>
    %17 = arith.addf %15, %16 : vector<1x1x16x16xf32>
    %18 = vector.extract_strided_slice %14 {offsets = [0, 0, 2, 1], sizes = [1, 1, 16, 16], strides = [1, 1, 1, 1]} : vector<1x1x18x18xf32> to vector<1x1x16x16xf32>
    %19 = arith.addf %17, %18 : vector<1x1x16x16xf32>
    %20 = vector.extract_strided_slice %14 {offsets = [0, 0, 1, 0], sizes = [1, 1, 16, 16], strides = [1, 1, 1, 1]} : vector<1x1x18x18xf32> to vector<1x1x16x16xf32>
    %21 = arith.addf %19, %20 : vector<1x1x16x16xf32>
    %22 = vector.extract_strided_slice %14 {offsets = [0, 0, 1, 2], sizes = [1, 1, 16, 16], strides = [1, 1, 1, 1]} : vector<1x1x18x18xf32> to vector<1x1x16x16xf32>
    %23 = arith.addf %21, %22 : vector<1x1x16x16xf32>
    %24 = arith.mulf %1, %23 : vector<1x1x16x16xf32>
    %cst_30 = arith.constant 2.000000e+00 : f32
    %25 = vector.broadcast %cst_30 : f32 to vector<1x1x16x16xf32>
    %26 = arith.mulf %25, %24 : vector<1x1x16x16xf32>
    %cst_31 = arith.constant dense<0.000000e+00> : vector<1x1xf32>
    %27 = vector.multi_reduction <add>, %24, %cst_31 [2, 3] : vector<1x1x16x16xf32> to vector<1x1xf32>
    %cst_32 = arith.constant dense<0.000000e+00> : vector<1xf32>
    %28 = vector.multi_reduction <add>, %27, %cst_32 [1] : vector<1x1xf32> to vector<1xf32>
    %29 = vector.shape_cast %28 : vector<1xf32> to vector<1x1xf32>
    %cst_33 = arith.constant -2.500000e-01 : f32
    %30 = vector.broadcast %cst_33 : f32 to vector<1x1xf32>
    %31 = arith.mulf %30, %29 : vector<1x1xf32>
    %cst_34 = arith.constant dense<0.000000e+00> : vector<1x1xf32>
    %32 = vector.multi_reduction <add>, %1, %cst_34 [2, 3] : vector<1x1x16x16xf32> to vector<1x1xf32>
    %cst_35 = arith.constant dense<0.000000e+00> : vector<1xf32>
    %33 = vector.multi_reduction <add>, %32, %cst_35 [1] : vector<1x1xf32> to vector<1xf32>
    %34 = vector.shape_cast %33 : vector<1xf32> to vector<1x1xf32>
    %cst_36 = arith.constant 2.560000e+02 : f32
    %35 = vector.broadcast %cst_36 : f32 to vector<1x1xf32>
    %36 = arith.divf %34, %35 : vector<1x1xf32>
    %c0_37 = arith.constant 0 : index
    %c0_38 = arith.constant 0 : index
    %c0_39 = arith.constant 0 : index
    %37 = vector.load %arg5[%c0_37, %c0_38, %c0_39] : memref<1x1x4xf32, #tpu.memory_space<vmem>>, vector<1x1x1xf32>
    %38 = vector.shape_cast %37 : vector<1x1x1xf32> to vector<1x1xf32>
    %39 = vector.shape_cast %31 : vector<1x1xf32> to vector<1x1x1xf32>
    tpu.vector_store %arg5[%c0_37, %c0_38, %c0_39], %39 {strides = array<i32>} : memref<1x1x4xf32, #tpu.memory_space<vmem>>, vector<1x1x1xf32>,
    %40 = arith.mulf %31, %31 : vector<1x1xf32>
    %c0_40 = arith.constant 0 : index
    %c0_41 = arith.constant 0 : index
    %c1_42 = arith.constant 1 : index
    %41 = vector.load %arg5[%c0_40, %c0_41, %c1_42] : memref<1x1x4xf32, #tpu.memory_space<vmem>>, vector<1x1x1xf32>
    %42 = vector.shape_cast %41 : vector<1x1x1xf32> to vector<1x1xf32>
    %43 = vector.shape_cast %40 : vector<1x1xf32> to vector<1x1x1xf32>
    tpu.vector_store %arg5[%c0_40, %c0_41, %c1_42], %43 {strides = array<i32>} : memref<1x1x4xf32, #tpu.memory_space<vmem>>, vector<1x1x1xf32>,
    %44 = math.absf %36 : vector<1x1xf32>
    %c0_43 = arith.constant 0 : index
    %c0_44 = arith.constant 0 : index
    %c2 = arith.constant 2 : index
    %45 = vector.load %arg5[%c0_43, %c0_44, %c2] : memref<1x1x4xf32, #tpu.memory_space<vmem>>, vector<1x1x1xf32>
    %46 = vector.shape_cast %45 : vector<1x1x1xf32> to vector<1x1xf32>
    %47 = vector.shape_cast %44 : vector<1x1xf32> to vector<1x1x1xf32>
    tpu.vector_store %arg5[%c0_43, %c0_44, %c2], %47 {strides = array<i32>} : memref<1x1x4xf32, #tpu.memory_space<vmem>>, vector<1x1x1xf32>,
    %48 = arith.mulf %36, %36 : vector<1x1xf32>
    %c0_45 = arith.constant 0 : index
    %c0_46 = arith.constant 0 : index
    %c3 = arith.constant 3 : index
    %49 = vector.load %arg5[%c0_45, %c0_46, %c3] : memref<1x1x4xf32, #tpu.memory_space<vmem>>, vector<1x1x1xf32>
    %50 = vector.shape_cast %49 : vector<1x1x1xf32> to vector<1x1xf32>
    %51 = vector.shape_cast %48 : vector<1x1xf32> to vector<1x1x1xf32>
    tpu.vector_store %arg5[%c0_45, %c0_46, %c3], %51 {strides = array<i32>} : memref<1x1x4xf32, #tpu.memory_space<vmem>>, vector<1x1x1xf32>,
    %cst_47 = arith.constant 0.000000e+00 : f32
    %52 = vector.broadcast %cst_47 : f32 to vector<1x1x16x16xf32>
    %53 = arith.subf %52, %26 : vector<1x1x16x16xf32>
    %54 = arith.mulf %53, %2 : vector<1x1x16x16xf32>
    %55 = math.exp %54 : vector<1x1x16x16xf32>
    %cst_48 = arith.constant 0.000000e+00 : f32
    %56 = vector.broadcast %cst_48 : f32 to vector<1x1x16x16xf32>
    %57 = arith.cmpf ole, %26, %56 : vector<1x1x16x16xf32>
    %cst_49 = arith.constant 1.000000e+00 : f32
    %58 = vector.broadcast %cst_49 : f32 to vector<1x1x16x16xf32>
    %59 = arith.select %57, %58, %55 : vector<1x1x16x16xi1>, vector<1x1x16x16xf32>
    %c0_50 = arith.constant 0 : index
    %c0_51 = arith.constant 0 : index
    %c0_52 = arith.constant 0 : index
    %c0_53 = arith.constant 0 : index
    %60 = vector.load %arg2[%c0_50, %c0_51, %c0_52, %c0_53] : memref<1x1x16x16xf32, #tpu.memory_space<vmem>>, vector<1x1x16x16xf32>
    %c0_54 = arith.constant 0 : index
    %c0_55 = arith.constant 0 : index
    %61 = vector.load %arg3[%c0_54, %c0_55] : memref<16x16xf32, #tpu.memory_space<vmem>>, vector<16x16xf32>
    %cst_56 = arith.constant 0.899999976 : f32
    %62 = vector.broadcast %cst_56 : f32 to vector<16x16xf32>
    %63 = arith.cmpf ogt, %61, %62 : vector<16x16xf32>
    %64 = arith.cmpf olt, %60, %59 : vector<1x1x16x16xf32>
    %65 = vector.shape_cast %63 : vector<16x16xi1> to vector<1x1x16x16xi1>
    %66 = arith.andi %64, %65 : vector<1x1x16x16xi1>
    %67 = arith.extui %66 : vector<1x1x16x16xi1> to vector<1x1x16x16xi32>
    %68 = arith.sitofp %67 : vector<1x1x16x16xi32> to vector<1x1x16x16xf32>
    %cst_57 = arith.constant 2.000000e+00 : f32
    %69 = vector.broadcast %cst_57 : f32 to vector<1x1x16x16xf32>
    %70 = arith.mulf %69, %68 : vector<1x1x16x16xf32>
    %cst_58 = arith.constant 1.000000e+00 : f32
    %71 = vector.broadcast %cst_58 : f32 to vector<1x1x16x16xf32>
    %72 = arith.subf %71, %70 : vector<1x1x16x16xf32>
    %73 = arith.mulf %1, %72 : vector<1x1x16x16xf32>
    %c0_59 = arith.constant 0 : index
    %c0_60 = arith.constant 0 : index
    %c0_61 = arith.constant 0 : index
    %c0_62 = arith.constant 0 : index
    %74 = vector.load %arg4[%c0_59, %c0_60, %c0_61, %c0_62] : memref<1x1x16x16xf32, #tpu.memory_space<vmem>>, vector<1x1x16x16xf32>
    tpu.vector_store %arg4[%c0_59, %c0_60, %c0_61, %c0_62], %73 {strides = array<i32>} : memref<1x1x16x16xf32, #tpu.memory_space<vmem>>, vector<1x1x16x16xf32>,
    return
  }
  func.func @transform_0(%arg0: i32) -> (i32, i32, i32, i32) {
    %c0_i32 = arith.constant 0 : i32
    %c0_i32_0 = arith.constant 0 : i32
    %c0_i32_1 = arith.constant 0 : i32
    %c0_i32_2 = arith.constant 0 : i32
    return %arg0, %c0_i32, %c0_i32_0, %c0_i32_1 : i32, i32, i32, i32
  }
  func.func @transform_1(%arg0: i32) -> (i32, i32, i32, i32) {
    %c0_i32 = arith.constant 0 : i32
    %c0_i32_0 = arith.constant 0 : i32
    %c0_i32_1 = arith.constant 0 : i32
    %c0_i32_2 = arith.constant 0 : i32
    return %arg0, %c0_i32, %c0_i32_0, %c0_i32_1 : i32, i32, i32, i32
  }
  func.func @transform_2(%arg0: i32) -> (i32, i32) {
    %c0_i32 = arith.constant 0 : i32
    %c0_i32_0 = arith.constant 0 : i32
    %c0_i32_1 = arith.constant 0 : i32
    return %c0_i32, %c0_i32_0 : i32, i32
  }
  func.func @transform_3(%arg0: i32) -> (i32, i32, i32, i32) {
    %c0_i32 = arith.constant 0 : i32
    %c0_i32_0 = arith.constant 0 : i32
    %c0_i32_1 = arith.constant 0 : i32
    %c0_i32_2 = arith.constant 0 : i32
    return %arg0, %c0_i32, %c0_i32_0, %c0_i32_1 : i32, i32, i32, i32
  }
  func.func @transform_4(%arg0: i32) -> (i32, i32, i32) {
    %c0_i32 = arith.constant 0 : i32
    %c0_i32_0 = arith.constant 0 : i32
    %c0_i32_1 = arith.constant 0 : i32
    return %arg0, %c0_i32, %c0_i32_0 : i32, i32, i32
  }
}

</mosaic_0001>

<bundles_post_ra>
// kernel: tpu_custom_call.1
= control target key start
LH: loop header
LB: loop body
LE: loop exit
PB: predicated region body
PF: predicated region fallthrough
CT: control target
= control target key end

     0   :  { %10 = vsyncpa [#allocation4], 0  ;;  %s1012_s0 = inlined_call_operand.hbm [shape: f32[2,2,16,16], index: 0, kind: input, shape index: {}, may-alias: {0,3}]   ;;  %s1013_s1 = inlined_call_operand.vmem [shape: f32[2,1,16,16], index: 1, kind: input, shape index: {}]   ;;  %s1014_s2 = inlined_call_operand.vmem [shape: f32[16,16], index: 2, kind: input, shape index: {}]   ;;  %s1015_s3 = inlined_call_operand.hbm [shape: f32[2,2,16,16], index: 3, kind: output, shape index: {0}, may-alias: {0,3}]   ;;  %s1016_s4 = inlined_call_operand.hbm [shape: f32[2,1,4], index: 4, kind: output, shape index: {1}]  }
   0x1   :  { %12 = vsyncpa [#allocation4 + $0x1], 0 }
   0x2   :  { %13 = vsyncpa [#allocation5], 0 }
   0x3   :  { %15 = vsyncpa [#allocation5 + $0x1], 0 }
   0x4   :  { %16 = vsyncpa [#allocation8], 0 }
   0x5   :  { %18 = vsyncpa [#allocation8 + $0x1], 0  ;;  %s820_s15 = smov 0   ;;  %s822_s16 = smov 0  }
   0x6   :  { %s824_s17 = smov 0   ;;  %s826_s18 = smov 0  }
   0x7 LB: > { %s841_s19 = sadd.s32 4294967295, %s783_s18   ;;  %s567_s20 = sadd.s32 4294967294, %s783_s18   ;;  %s783_s18 = sphi %s826_s18, %s1026_s18   ;;  %s779_s17 = sphi %s824_s17, %s1025_s17   ;;  %s775_s16 = sphi %s822_s16, %s1024_s16   ;;  %s771_s15 = sphi %s820_s15, %s1023_s15  }
   0x8   : > { %s845_s21 = sadd.s32 1, %s783_s18   ;;  %s31_s22 = sadd.s32 1, %s779_s17 }
   0x9   : > { %s28_s23 = ssub.s32 %s783_s18, %s845_s21  ;;  %p38_p0 = scmp.ne.s32.totalorder %s779_s17, %s775_s16 }
   0xa   : > { %p29_p1 = scmp.eq.s32.totalorder %s28_s23, 0  ;;  %p39_p2 = scmp.eq.s32.totalorder %s783_s18, 0 }
   0xb   : > { %p44_p3 = scmp.ne.s32.totalorder %s775_s16, %s771_s15  ;;  %p45_p4 = scmp.eq.s32.totalorder %s841_s19, 0 }
   0xc   : > { %s857_s24 = scalar_select %p29_p1, %s779_s17, %s31_s22  }
   0xd   : > { %p859_p5 = por %p39_p2, %p38_p0  ;;  %p863_p6 = por %p45_p4, %p44_p3 }
   0xe   : > { %p115_p7 = scmp.eq.s32.totalorder %s841_s19, 1  ;;  %p121_p8 = scmp.eq.s32.totalorder %s567_s20, 1 }
   0xf   : > { %p605_p10 = scmp.lt.s32.totalorder %s783_s18, 2  ;;  %s170_s29 = sand.u32 1, %s779_s17  }
  0x10   : > { %p870_p11 = por %p115_p7, %p38_p0  ;;  %p874_p12 = por %p121_p8, %p44_p3 }
  0x11   : > { %s585_s30 = sshll.u32 %s783_s18, 5  ;;  %s570_s5 = sshll.u32 %s170_s29, 5 }
  0x12   : > { %s179_s8 = scalar_lea.hbm %s1012_s0, %s585_s30  ;;  %s174_s10 = scalar_lea.vmem [#allocation3], %s570_s5 }
  0x13   : > { %s180_s9 = sshll.u32 %s179_s8, 4  ;;  %s182_s11 = sshll.u32 %s174_s10, 4  ;;  %s181_s9 = int_to_ptr.hbm [resolvable:$true] %s180_s9  ;;  %s183_s11 = int_to_ptr.vmem [resolvable:$true] %s182_s11 }
  0x14   : > { %p885_p13 = pnand %p605_p10, %p859_p5  ;;  %p573_p0 = scmp.ge.s32.totalorder %s783_s18, 1 }
  0x15   : > { %p198_p1 = scmp.lt.s32.totalorder %s783_s18, 3  ;;  %s171_s13 = scalar_lea.sflag [#allocation4], %s170_s29 }
  0x16   : > { %s655_s14 = sshra.s32 %s181_s9, 4  ;;  %p659_p3 = pneg %p885_p13  ;;  %s656_s14 = int_to_ptr.hbm [resolvable:$true] %s655_s14 }
  0x17   : > { %s657_s20 = scalar_lea.hbm %s656_s14, 32  ;;  %s662_s25 = scalar_lea.hbm %s1012_s0, 64 }
  0x18   : > { %p658_p2 = scmp.ne.s32.totalorder %s656_s14, %s657_s20  ;;  %p663_p5 = scmp.lt.s32.totalorder %s656_s14, %s1012_s0 }
  0x19   : > { %p664_p8 = scmp.lt.s32.totalorder %s662_s25, %s657_s20 }
  0x1a   : > { %p660_p4 = pnand %p659_p3, %p658_p2 }
  0x1b   : > { %p665_p10 = por %p664_p8, %p663_p5 }
  0x1c   : > { %p661_p7 = pneg %p660_p4 }
  0x1e   : > { %p666_p9 = pnand %p665_p10, %p661_p7 }
  0x20   : > { %669 = shalt.err (!%p666_p9)
}
  0x21   : > { %s785_s29 = smov 128   ;;  %s786_s6 = smov 8  }
  0x22   : > { %597 = dma.hbm_to_vmem [thread:$0]  (!%p885_p13), %s181_s9, 512, %s183_s11, %s171_s13, %s785_s29, %s785_s29, %s786_s6  }
  0x23   : > { %p199_p2 = pnand %p573_p0, %p198_p1 }
  0x24   : > { %s906_s7 = sand.u32 (!%p199_p2), 1, %s775_s16  }
  0x25   : > { %202 = sbr.rel (%p199_p2) target bundleno = 558 (0x22e), region = 32  ;;  %s574_s8 = sshll.u32 (!%p199_p2), %s906_s7, 5 }
  0x26   : > { %s205_s10 = scalar_lea.sflag (!%p199_p2), [#allocation4], %s906_s7  ;;  %s910_s14 = scalar_lea.vmem (!%p199_p2), [#allocation3], %s574_s8 }
  0x2a   : > { %758 = dma.done.wait (%p863_p6), %s205_s10, 512  }
  0x2b   : > { %760 = vsyncadd (%p863_p6), %s205_s10, 4294966784  ;;  %vm252_vm0 = vcmask 146432   ;;  %vm255_vm1 = vcmask 140288   ;;  %v787_v0 = vmov 0.0   ;;  %v920_v1 = vld [vmem:[%s910_s14] sm:$0xff]  ;;  %s788_s9 = smov 1  }
  0x2c   : > { %253 = vst.msk [vmem:[#allocation2] sm:$0xff] %vm252_vm0, %v787_v0  ;;  %259 = vrot.lane.b32.xlu0 %v920_v1, %s788_s9  ;;  %s789_s11 = smov 113   ;;  %s790_s26 = smov 17   ;;  %v927_v2 = vld [vmem:[%s910_s14 + $0x8] sm:$0xff]  ;;  %vm265_vm2 = vcmask 138248   ;;  %vm270_vm3 = vcmask 131080  }
  0x2d   : > { %254 = vst.msk [vmem:[#allocation2 + $0x8] sm:$0xff] %vm252_vm0, %v787_v0  ;;  %272 = vrot.lane.b32.xlu1 %v920_v1, %s789_s11  ;;  %281 = vrot.lane.b32.xlu2 %v920_v1, %s790_s26  ;;  %vm278_vm4 = vcmask 7168   ;;  %vm287_vm5 = vcmask 146568   ;;  %vm268_vm6 = vcmask 138255   ;;  %vm308_vm7 = vcmask 1046528   ;;  %s791_s12 = smov 127  }
  0x2e   : > { %256 = vst.msk [vmem:[#allocation2 + $0x10] sm:$0x3] %vm255_vm1, %v787_v0  ;;  %vm298_vm8 = vcmask 1045504   ;;  %vm342_vm9 = vcmask 130048   ;;  %p243_p6 = scmp.lt.s32.totalorder %s841_s19, 1  ;;  %v251_v38 = vld [vmem:[%s910_s14 + $0x18] sm:$0xff] }
  0x2f   : > { %v356_v32 = vsel %vm342_vm9, %v920_v1, 0.0  ;;  %v357_v33 = vsel %vm342_vm9, %v927_v2, 0.0  ;;  %v402_v42 = vld [vmem:[%s1014_s2 + $0x8] sm:$0xff]  ;;  %s575_s29 = sshll.u32 %s906_s7, 4  ;;  %v401_v60 = vld [vmem:[%s1014_s2] sm:$0xff]  ;;  %s705_s5 = scalar_lea.hbm %s1015_s3, 64 }
  0x30   : > { %v358_v34 = vadd.f32 %v357_v33, %v356_v32  ;;  %s244_s13 = scalar_select %p243_p6, %s841_s19, 1  ;;  %vm404_vm10 = vcmp.gt.f32.partialorder %v402_v42, 0.9  ;;  %v250_v53 = vld [vmem:[%s910_s14 + $0x10] sm:$0xff]  ;;  %vm403_vm14 = vcmp.gt.f32.partialorder %v401_v60, 0.9 }
  0x31   : > { %s236_s6 = scalar_lea.vmem [#allocation6], %s575_s29 }
  0x32   : > { %s586_s20 = sshll.u32 %s244_s13, 4 }
  0x33   : > { %s247_s25 = scalar_lea.vmem %s1013_s1, %s586_s20  ;;  %s422_s20 = scalar_lea.sflag [#allocation5], %s906_s7 }
  0x34   : > { %261 = vrot.lane.b32.xlu0 %v927_v2, %s788_s9  ;;  %v400_v43 = vld [vmem:[%s247_s25 + $0x8] sm:$0xff]  ;;  %v399_v61 = vld [vmem:[%s247_s25] sm:$0xff] }
  0x35   : > { %274 = vrot.lane.b32.xlu1 %v927_v2, %s789_s11  ;;  %283 = vrot.lane.b32.xlu2 %v927_v2, %s790_s26 }
  0x87   : > { %v282_v3 = vpop.permute.xlu2 %281 }
  0x8f   : > { %v284_v8 = vpop.permute.xlu2 %283 }
  0x9e   : > { %v260_v4 = vpop.permute.xlu0 %259 }
  0x9f   : > { %v273_v5 = vpop.permute.xlu1 %272  ;;  %266 = vst.msk [vmem:[#allocation2 + $0x1] sm:$0xff] %vm265_vm2, %v260_v4 }
  0xa0   : > { %271 = vst.msk [vmem:[#allocation2 + $0x11] sm:$0x1] %vm270_vm3, %v260_v4 }
  0xa1   : > { %279 = vst.msk [vmem:[#allocation2 + $0x1] sm:$0xff] %vm278_vm4, %v273_v5 }
  0xa2   : > { %288 = vst.msk [vmem:[#allocation2 + $0x1] sm:$0xff] %vm287_vm5, %v282_v3 }
  0xa6   : > { %v262_v6 = vpop.permute.xlu0 %261 }
  0xa7   : > { %v275_v7 = vpop.permute.xlu1 %274  ;;  %267 = vst.msk [vmem:[#allocation2 + $0x9] sm:$0xff] %vm265_vm2, %v262_v6 }
  0xa8   : > { %269 = vst.msk [vmem:[#allocation2 - $0x7] sm:$0x80] %vm268_vm6, %v262_v6 }
  0xa9   : > { %280 = vst.msk [vmem:[#allocation2 + $0x9] sm:$0xff] %vm278_vm4, %v275_v7 }
  0xaa   : > { %289 = vst.msk [vmem:[#allocation2 + $0x9] sm:$0xff] %vm287_vm5, %v284_v8 }
  0xaf   : > { %v290_v9 = vld [vmem:[#allocation2] sm:$0xff] }
  0xb0   : > { %v309_v12 = vrot.slane %v290_v9, 1  ;;  %v299_v13 = vrot.slane %v290_v9, 2 }
  0xb1   : > { %v291_v10 = vld [vmem:[#allocation2 + $0x8] sm:$0xff]  ;;  %v292_v11 = vld [vmem:[#allocation2 + $0x10] sm:$0x3] }
  0xb2   : > { %v310_v14 = vrot.slane %v291_v10, 1  ;;  %v312_v15 = vrot.slane %v292_v11, 1  ;;  %v302_v16 = vrot.slane %v292_v11, 2  ;;  %v300_v17 = vrot.slane %v291_v10, 2 }
  0xb4   : > { %v313_v18 = vsel %vm308_vm7, %v310_v14, %v312_v15  ;;  %v311_v19 = vsel %vm308_vm7, %v309_v12, %v310_v14  ;;  %v303_v20 = vsel %vm298_vm8, %v300_v17, %v302_v16  ;;  %v301_v21 = vsel %vm298_vm8, %v299_v13, %v300_v17 }
  0xb5   : > { %316 = vrot.lane.b32.xlu1 %v313_v18, %s788_s9  ;;  %322 = vrot.lane.b32.xlu2 %v311_v19, %s791_s12  ;;  %v307_v22 = vadd.f32 %v303_v20, %v291_v10  ;;  %v306_v23 = vadd.f32 %v301_v21, %v290_v9 }
  0xb6   : > { %314 = vrot.lane.b32.xlu0 %v311_v19, %s788_s9  ;;  %s587_s9 = sshll.u32 %s841_s19, 5 }
  0xb7   : > { %s437_s26 = scalar_lea.hbm %s1015_s3, %s587_s9 }
  0xb8   : > { %s440_s13 = sshll.u32 %s437_s26, 4  ;;  %s441_s13 = int_to_ptr.hbm [resolvable:$true] %s440_s13 }
  0xb9   : > { %s699_s22 = sshra.s32 %s441_s13, 4  ;;  %s700_s22 = int_to_ptr.hbm [resolvable:$true] %s699_s22 }
  0xba   : > { %s701_s23 = scalar_lea.hbm %s700_s22, 16  ;;  %p706_p1 = scmp.lt.s32.totalorder %s700_s22, %s1015_s3 }
  0xbb   : > { %p702_p9 = scmp.ne.s32.totalorder %s700_s22, %s701_s23  ;;  %p707_p3 = scmp.lt.s32.totalorder %s705_s5, %s701_s23 }
  0xbd   : > { %p703_p13 = pnand %p702_p9, %p870_p11  ;;  %p708_p4 = por %p707_p3, %p706_p1 }
  0xbe   : > { %324 = vrot.lane.b32.xlu0 %v313_v18, %s791_s12 }
  0xbf   : > { %p704_p0 = pneg %p703_p13 }
  0xc1   : > { %p709_p7 = pnand %p708_p4, %p704_p0 }
 0x10f   : > { %v323_v26 = vpop.permute.xlu2 %322 }
 0x127   : > { %v317_v28 = vpop.permute.xlu1 %316 }
 0x128   : > { %v315_v24 = vpop.permute.xlu0 %314  ;;  %v321_v29 = vadd.f32 %v317_v28, %v307_v22 }
 0x129   : > { %v320_v25 = vadd.f32 %v315_v24, %v306_v23 }
 0x12b   : > { %v328_v27 = vadd.f32 %v323_v26, %v320_v25 }
 0x12d   : > { %332 = vrot.lane.b32.xlu1 %v328_v27, %s791_s12 }
 0x130   : > { %v325_v30 = vpop.permute.xlu0 %324 }
 0x131   : > { %v329_v31 = vadd.f32 %v325_v30, %v321_v29 }
 0x133   : > { %334 = vrot.lane.b32.xlu2 %v329_v31, %s791_s12  ;;  %s438_s12 = sshll.u32 %s236_s6, 4  ;;  %s439_s12 = int_to_ptr.vmem [resolvable:$true] %s438_s12 }
 0x157   : > { %359 = vadd.xlane.f32.xlu1 %v358_v34 }
 0x18d   : > { %v335_v35 = vpop.permute.xlu2 %334 }
 0x18e   : > { %v339_v36 = vmul.f32 %v335_v35, %v927_v2 }
 0x190   : > { %v341_v37 = vmul.f32 2.0, %v339_v36  ;;  %v344_v51 = vsel %vm342_vm9, %v339_v36, 0.0 }
 0x192   : > { %v388_v39 = vsub.f32 0.0, %v341_v37  ;;  %vm396_vm11 = vcmp.le.f32.partialorder %v341_v37, 0.0 }
 0x194   : > { %v390_v40 = vmul.f32 %v388_v39, %v251_v38 }
 0x196   : > { %v393_v41 = vmul.f32 1.442695, %v390_v40 }
 0x198   : > { %649 = vpow2.f32 %v393_v41 }
 0x19e   : > { %v650_v44 = vpop.eup %649 }
 0x19f   : > { %v398_v45 = vsel %vm396_vm11, 1.0, %v650_v44  ;;  %v333_v46 = vpop.permute.xlu1 %332 }
 0x1a0   : > { %vm406_vm12 = vcmp.lt.f32.partialorder %v400_v43, %v398_v45  ;;  %v338_v47 = vmul.f32 %v333_v46, %v920_v1 }
 0x1a1   : > { %vm408_vm13 = vmand %vm406_vm12, %vm404_vm10 }
 0x1a2   : > { %v579_v48 = vsel %vm408_vm13, 1.0, %v787_v0  ;;  %v340_v49 = vmul.f32 2.0, %v338_v47  ;;  %v343_v50 = vsel %vm342_vm9, %v338_v47, 0.0 }
 0x1a3   : > { %v414_v52 = vmul.f32 2.0, %v579_v48  ;;  %v345_v54 = vadd.f32 %v344_v51, %v343_v50 }
 0x1a4   : > { %v387_v55 = vsub.f32 0.0, %v340_v49  ;;  %vm395_vm15 = vcmp.le.f32.partialorder %v340_v49, 0.0 }
 0x1a5   : > { %v416_v56 = vsub.f32 1.0, %v414_v52  ;;  %346 = vadd.xlane.f32.xlu0 %v345_v54 }
 0x1a6   : > { %v389_v57 = vmul.f32 %v387_v55, %v250_v53 }
 0x1a7   : > { %v418_v58 = vmul.f32 %v416_v56, %v927_v2 }
 0x1a8   : > { %v391_v59 = vmul.f32 1.442695, %v389_v57 }
 0x1a9   : > { %420 = vst.msk [vmem:[%s236_s6 + $0x8] sm:$0xff] %vm342_vm9, %v418_v58 }
 0x1aa   : > { %651 = vpow2.f32 %v391_v59 }
 0x1b0   : > { %v652_v62 = vpop.eup %651 }
 0x1b1   : > { %v397_v63 = vsel %vm395_vm15, 1.0, %v652_v62 }
 0x1b2   : > { %vm405_vm0 = vcmp.lt.f32.partialorder %v399_v61, %v397_v63 }
 0x1b3   : > { %vm407_vm1 = vmand %vm405_vm0, %vm403_vm14 }
 0x1b4   : > { %v578_v2 = vsel %vm407_vm1, 1.0, %v787_v0 }
 0x1b5   : > { %v413_v3 = vmul.f32 2.0, %v578_v2 }
 0x1b7   : > { %v415_v4 = vsub.f32 1.0, %v413_v3 }
 0x1b9   : > { %v417_v5 = vmul.f32 %v415_v4, %v920_v1 }
 0x1bb   : > { %419 = vst.msk [vmem:[%s236_s6] sm:$0xff] %vm342_vm9, %v417_v5 }
 0x1bc   : > { %712 = shalt.err (!%p709_p7)
}
 0x1bd   : > { %s792_s6 = smov 128   ;;  %s793_s10 = smov 8   ;;  %v794_v0 = vmov 256.0   ;;  %vm376_vm3 = vcmask 0   ;;  %vm379_vm4 = vcmask 8200   ;;  %vm382_vm5 = vcmask 16400  }
 0x1be   : > { %590 = dma.vmem_to_hbm [thread:$0]  (%p870_p11), %s439_s12, 256, %s441_s13, %s422_s20, %s792_s6, %s792_s6, %s793_s10   ;;  %653 = vrcp.f32 %v794_v0  ;;  %vm385_vm6 = vcmask 24600  }
 0x1bf   : > { %s452_s11 = scalar_lea.hbm %s1016_s4, %s841_s19  ;;  %s242_s26 = scalar_lea.vmem [#allocation7], %s906_s7 }
 0x1c0   : > { %s454_s12 = sshll.u32 %s242_s26, 4  ;;  %s456_s13 = sshll.u32 %s452_s11, 4  ;;  %s455_s12 = int_to_ptr.vmem [resolvable:$true] %s454_s12  ;;  %s457_s13 = int_to_ptr.hbm [resolvable:$true] %s456_s13 }
 0x1c1   : > { %s427_s19 = scalar_lea.sflag [#allocation8], %s906_s7  ;;  %s727_s20 = sshra.s32 %s457_s13, 4  ;;  %s728_s20 = int_to_ptr.hbm [resolvable:$true] %s727_s20 }
 0x1c2   : > { %s729_s22 = scalar_lea.hbm %s728_s20, 1  ;;  %s733_s30 = scalar_lea.hbm %s1016_s4, 2 }
 0x1c3   : > { %p730_p5 = scmp.ne.s32.totalorder %s728_s20, %s729_s22  ;;  %p734_p2 = scmp.lt.s32.totalorder %s728_s20, %s1016_s4 }
 0x1c4   : > { %v654_v7 = vpop.eup %653  ;;  %p735_p6 = scmp.lt.s32.totalorder %s733_s30, %s729_s22 }
 0x1c5   : > { %v369_v9 = vmul.f32 256.0, %v654_v7  ;;  %vm373_vm2 = vweird.f32 %v654_v7  ;;  %p731_p8 = pnand %p730_p5, %p870_p11 }
 0x1c6   : > { %p736_p9 = por %p735_p6, %p734_p2 }
 0x1c7   : > { %v370_v11 = vsub.f32 1.0, %v369_v9  ;;  %p732_p10 = pneg %p731_p8 }
 0x1c9   : > { %v371_v14 = vmul.f32 %v654_v7, %v370_v11  ;;  %p737_p13 = pnand %p736_p9, %p732_p10 }
 0x1ca   : > { %v360_v1 = vpop.xlane.xlu1 %359 }
 0x1cb   : > { %v361_v6 = vrot.slane %v360_v1, 4  ;;  %v372_v18 = vadd.f32 %v654_v7, %v371_v14 }
 0x1cd   : > { %v362_v8 = vadd.f32 %v361_v6, %v360_v1  ;;  %v374_v22 = vsel %vm373_vm2, %v654_v7, %v372_v18 }
 0x1cf   : > { %v363_v10 = vrot.slane %v362_v8, 2 }
 0x1d1   : > { %v364_v12 = vadd.f32 %v363_v10, %v362_v8 }
 0x1d3   : > { %v365_v17 = vrot.slane %v364_v12, 1 }
 0x1d5   : > { %v366_v21 = vadd.f32 %v365_v17, %v364_v12 }
 0x1d7   : > { %v375_v25 = vmul.f32 %v374_v22, %v366_v21 }
 0x1d9   : > { %v381_v28 = vand.u32 2147483647, %v375_v25  ;;  %v384_v29 = vmul.f32 %v375_v25, %v375_v25 }
 0x218   : > { %v347_v13 = vpop.xlane.xlu0 %346 }
 0x219   : > { %v348_v15 = vrot.slane %v347_v13, 4 }
 0x21b   : > { %v349_v16 = vadd.f32 %v348_v15, %v347_v13 }
 0x21d   : > { %v350_v19 = vrot.slane %v349_v16, 2 }
 0x21f   : > { %v351_v20 = vadd.f32 %v350_v19, %v349_v16 }
 0x221   : > { %v352_v23 = vrot.slane %v351_v20, 1 }
 0x223   : > { %v353_v24 = vadd.f32 %v352_v23, %v351_v20 }
 0x225   : > { %v355_v26 = vmul.f32 -0.25, %v353_v24 }
 0x227   : > { %v378_v27 = vmul.f32 %v355_v26, %v355_v26  ;;  %377 = vst.msk [vmem:[%s242_s26] sm:$0x1] %vm376_vm3, %v355_v26 }
 0x229   : > { %380 = vst.msk [vmem:[%s242_s26] sm:$0x1] %vm379_vm4, %v378_v27 }
 0x22a   : > { %383 = vst.msk [vmem:[%s242_s26] sm:$0x1] %vm382_vm5, %v381_v28 }
 0x22b   : > { %386 = vst.msk [vmem:[%s242_s26] sm:$0x1] %vm385_vm6, %v384_v29 }
 0x22c   : > { %740 = shalt.err (!%p737_p13)
}
 0x22d   : > { %591 = dma.vmem_to_hbm [thread:$0]  (%p870_p11), %s455_s12, 16, %s457_s13, %s427_s19  }
 0x22e PF: > { %s468_s7 = sand.u32 1, %s771_s15   ;;  %p1022_p0 = scmp.ge.s32.totalorder %s783_s18, 2 }
 0x22f   : > { %s469_s8 = scalar_lea.sflag [#allocation5], %s468_s7 }
 0x230   : > { %p599_p1 = pnand %p1022_p0, %p874_p12 }
 0x232   : > { %p600_p3 = pneg %p599_p1 }
 0x234   : > { %762 = dma.done.wait (%p600_p3), %s469_s8, 256  }
 0x235   : > { %764 = vsyncadd (%p600_p3), %s469_s8, 4294967040  ;;  %s479_s6 = scalar_lea.sflag [#allocation8], %s468_s7 }
 0x236   : > { %766 = dma.done.wait (%p600_p3), %s479_s6, 16  }
 0x237   : > { %768 = vsyncadd (%p600_p3), %s479_s6, 4294967280  ;;  %p21_p11 = scmp.ge.s32.totalorder %s845_s21, 4   ;;  %s1023_s15 = smov %s775_s16 }
 0x238   : > { %s1024_s16 = smov %s779_s17  ;;  %s1025_s17 = smov %s857_s24 }
 0x239   : > { %s1026_s18 = smov %s845_s21  ;;  %23 = sbr.rel (!%p21_p11) target bundleno = 7 (0x7), region = 97 }
 0x23e   :  { %484 = vsyncpa [#allocation4], 1 }
 0x23f   :  { %486 = vsyncpa [#allocation4 + $0x1], 1 }
 0x240   :  { %487 = vsyncpa [#allocation5], 1 }
 0x241   :  { %489 = vsyncpa [#allocation5 + $0x1], 1 }
 0x242   :  { %490 = vsyncpa [#allocation8], 1 }
 0x243   :  { %492 = vsyncpa [#allocation8 + $0x1], 1 }

</bundles_post_ra>
